<compile_context>
chip_gen: v7x
topology: tpu7x:2x2x1
jax: 0.10.0
libtpu: 0.0.40
codegen_flags: <defaults>
</compile_context>

<pallas_src>
import functools

import jax
import jax.numpy as jnp
from jax.experimental import pallas as pl
from jax.experimental.pallas import tpu as pltpu


def _round_up(x, m):
    return (x + m - 1) // m * m


# ----------------------------------------------------------------------------
# Fused kernel: conv1 (im2col matmul + ReLU) -> avgpool accum -> fc MLP -> head
# ----------------------------------------------------------------------------
def posenet_fused_kernel(p_ref, wc_ref, w1_ref, b1_ref, w2_ref, b2_ref,
                         enc_ref, out_ref, acc_ref, *, inv_p):
    """Grid = (batch, spatial tiles). Pooled features for one image are accumulated
    across the spatial-tile (reduction) axis; MLP + pose head run on the last tile."""
    p = pl.program_id(1)

    # conv1 as an im2col matmul (bf16 x bf16, f32 accumulate) + ReLU : (TILE_P, 64)
    feats = jnp.maximum(
        jnp.dot(p_ref[...], wc_ref[...], preferred_element_type=jnp.float32), 0.0)

    # AdaptiveAvgPool2d(1): running per-image sum (zero-padded rows contribute 0).
    tile_sum = jnp.sum(feats, axis=0, keepdims=True)            # (1, 64) f32

    @pl.when(p == 0)
    def _():
        acc_ref[...] = jnp.zeros_like(acc_ref)

    acc_ref[...] += tile_sum

    @pl.when(p == pl.num_programs(1) - 1)
    def _():
        pooled = (acc_ref[...] * inv_p).astype(jnp.bfloat16)    # (1, 64)
        # feature_extractor.fc : Linear(64 -> 512) + ReLU (+ Dropout = identity, eval)
        h = jnp.dot(pooled, w1_ref[...],
                    preferred_element_type=jnp.float32) + b1_ref[...]
        enc = jnp.maximum(h, 0.0)                                # (1, 512) f32
        enc_ref[...] = enc
        # pose head: Linear(512 -> 6), lane-padded to 128 (sliced in wrapper)
        out_ref[...] = jnp.dot(enc.astype(jnp.bfloat16), w2_ref[...],
                               preferred_element_type=jnp.float32) + b2_ref[...]


# ----------------------------------------------------------------------------
# Parameters / im2col glue / wrapper
# ----------------------------------------------------------------------------
def init_posenet_params(key, n_channels=1, feat_ch=64, hidden=512, output_dim=6):
    k1, k2, k3, k4, k5 = jax.random.split(key, 5)
    conv_w = jax.random.normal(k1, (feat_ch, n_channels, 7, 7), jnp.float32) * 0.1
    w1 = jax.random.normal(k2, (feat_ch, hidden), jnp.float32) / jnp.sqrt(feat_ch)
    b1 = jax.random.normal(k3, (1, hidden), jnp.float32) * 0.01
    w2 = jax.random.normal(k4, (hidden, output_dim), jnp.float32) / jnp.sqrt(hidden)
    b2 = jax.random.normal(k5, (1, output_dim), jnp.float32) * 0.01
    return dict(conv_w=conv_w, w1=w1, b1=b1, w2=w2, b2=b2)


def _im2col_stride2_k7_p3(x):
    """x: (N, C, H, W) NCHW -> patches (N, Ho*Wo, C*49), channel-major columns."""
    N, C, H, W = x.shape
    Ho = (H + 6 - 7) // 2 + 1
    Wo = (W + 6 - 7) // 2 + 1
    xp = jnp.pad(x, ((0, 0), (0, 0), (3, 3), (3, 3)))
    cols = []
    for kh in range(7):
        for kw in range(7):
            cols.append(xp[:, :, kh:kh + 2 * Ho:2, kw:kw + 2 * Wo:2])  # (N,C,Ho,Wo)
    patches = jnp.stack(cols, axis=2)                   # (N, C, 49, Ho, Wo)
    patches = patches.transpose(0, 3, 4, 1, 2)          # (N, Ho, Wo, C, 49)
    return patches.reshape(N, Ho * Wo, C * 49), Ho, Wo


@functools.partial(jax.jit, static_argnames=("get_encode", "return_both"))
def posenet_forward(params, x, get_encode=False, return_both=False):
    """x: (N, C, H, W) float32 (NCHW, matching the PyTorch module)."""
    conv_w = params["conv_w"]                            # (64, C, 7, 7)
    feat_ch = conv_w.shape[0]
    hidden = params["w1"].shape[1]
    out_dim = params["w2"].shape[1]

    patches, Ho, Wo = _im2col_stride2_k7_p3(x)
    N, P, K = patches.shape                              # P = Ho*Wo, K = C*49

    # Spatial tiling: >=512 rows/step keeps the pipeline near the HBM roofline at
    # real resolutions; tiny inputs collapse to a single tile.
    TILE_P = min(512, _round_up(P, 8))
    P_pad = _round_up(P, TILE_P)
    num_p_tiles = P_pad // TILE_P

    # Contraction dim padded only to a multiple of 64 (halves patch bytes vs 128 for C=1).
    Kpad = _round_up(K, 64)

    patches_p = jnp.pad(
        patches, ((0, 0), (0, P_pad - P), (0, Kpad - K))).astype(jnp.bfloat16)
    w_mat = conv_w.reshape(feat_ch, -1).T                # (K, 64), channel-major rows
    w_mat_p = jnp.pad(w_mat, ((0, Kpad - K), (0, 0))).astype(jnp.bfloat16)

    w1_bf = params["w1"].astype(jnp.bfloat16)
    b1 = params["b1"]

    # Lane-dense pose head: pad output_dim to 128, slice afterwards.
    out_pad = _round_up(out_dim, 128)
    w2_p = jnp.pad(params["w2"], ((0, 0), (0, out_pad - out_dim))).astype(jnp.bfloat16)
    b2_p = jnp.pad(params["b2"], ((0, 0), (0, out_pad - out_dim)))

    kernel = functools.partial(posenet_fused_kernel, inv_p=1.0 / float(P))

    enc3, out3 = pl.pallas_call(
        kernel,
        out_shape=(
            jax.ShapeDtypeStruct((N, 1, hidden), jnp.float32),
            jax.ShapeDtypeStruct((N, 1, out_pad), jnp.float32),
        ),
        grid=(N, num_p_tiles),
        in_specs=[
            pl.BlockSpec((pl.Squeezed(), TILE_P, Kpad), lambda n, p: (n, p, 0)),
            pl.BlockSpec((Kpad, feat_ch), lambda n, p: (0, 0)),
            pl.BlockSpec((feat_ch, hidden), lambda n, p: (0, 0)),
            pl.BlockSpec((1, hidden), lambda n, p: (0, 0)),
            pl.BlockSpec((hidden, out_pad), lambda n, p: (0, 0)),
            pl.BlockSpec((1, out_pad), lambda n, p: (0, 0)),
        ],
        out_specs=(
            pl.BlockSpec((pl.Squeezed(), 1, hidden), lambda n, p: (n, 0, 0)),
            pl.BlockSpec((pl.Squeezed(), 1, out_pad), lambda n, p: (n, 0, 0)),
        ),
        scratch_shapes=[pltpu.VMEM((1, feat_ch), jnp.float32)],
        compiler_params=pltpu.CompilerParams(
            dimension_semantics=("parallel", "arbitrary")),
    )(patches_p, w_mat_p, w1_bf, b1, w2_p, b2_p)

    encode = enc3[:, 0, :]                               # (N, 512)
    out = out3[:, 0, :out_dim]                           # (N, 6)

    if get_encode:
        if return_both:
            return encode, out
        return encode
    return out


# Pure-JAX reference of the implemented subgraph (conv1+ReLU -> avgpool -> MLP -> head).
def posenet_reference(params, x):
    y = jax.lax.conv_general_dilated(
        x, params["conv_w"], window_strides=(2, 2), padding=((3, 3), (3, 3)),
        dimension_numbers=("NCHW", "OIHW", "NCHW"))
    y = jnp.maximum(y, 0.0)
    pooled = y.mean(axis=(2, 3))
    enc = jnp.maximum(pooled @ params["w1"] + params["b1"], 0.0)
    out = enc @ params["w2"] + params["b2"]
    return enc, out


if __name__ == "__main__":
    key = jax.random.PRNGKey(0)
    pkey, xkey = jax.random.split(key)

    N, C, H, W = 2, 1, 16, 16                 # n_channels=1 (module default)
    params = init_posenet_params(pkey, n_channels=C)
    x = jax.random.normal(xkey, (N, C, H, W), jnp.float32)

    out = posenet_forward(params, x)                                   # (2, 6)
    enc, out_both = posenet_forward(params, x, get_encode=True, return_both=True)
    jax.block_until_ready((out, enc, out_both))

    assert out.shape == (N, 6)
    assert enc.shape == (N, 512)
    assert jnp.allclose(out, out_both)

    enc_gold, out_gold = posenet_reference(params, x)
    assert jnp.allclose(enc, enc_gold, atol=5e-2, rtol=5e-2), \
        float(jnp.max(jnp.abs(enc - enc_gold)))
    assert jnp.allclose(out, out_gold, atol=5e-2, rtol=5e-2), \
        float(jnp.max(jnp.abs(out - out_gold)))
    print("KERNEL_OK")
</pallas_src>

<mosaic_0001>
module attributes {stable_mosaic.version = 11 : i64} {
  func.func @posenet_fused_kernel(%arg0: i32, %arg1: i32, %arg2: memref<1x64x64xbf16, #tpu.memory_space<vmem>>, %arg3: memref<64x64xbf16, #tpu.memory_space<vmem>>, %arg4: memref<64x512xbf16, #tpu.memory_space<vmem>>, %arg5: memref<1x512xf32, #tpu.memory_space<vmem>>, %arg6: memref<512x128xbf16, #tpu.memory_space<vmem>>, %arg7: memref<1x128xf32, #tpu.memory_space<vmem>>, %arg8: memref<1x1x512xf32, #tpu.memory_space<vmem>>, %arg9: memref<1x1x128xf32, #tpu.memory_space<vmem>>, %arg10: memref<1x64xf32, #tpu.memory_space<vmem>>) attributes {dimension_semantics = [#tpu.dimension_semantics<parallel>, #tpu.dimension_semantics<arbitrary>], iteration_bounds = array<i64: 2, 1>, scalar_prefetch = 0 : i64, scratch_operands = 1 : i64, tpu.core_type = #tpu.core_type<tc>, window_params = [{transform_indices = @transform_0, window_bounds = array<i64: 1, 64, 64>}, {pipeline_mode = #tpu.pipeline_mode<synchronous>, transform_indices = @transform_1, window_bounds = array<i64: 64, 64>}, {pipeline_mode = #tpu.pipeline_mode<synchronous>, transform_indices = @transform_2, window_bounds = array<i64: 64, 512>}, {pipeline_mode = #tpu.pipeline_mode<synchronous>, transform_indices = @transform_3, window_bounds = array<i64: 1, 512>}, {pipeline_mode = #tpu.pipeline_mode<synchronous>, transform_indices = @transform_4, window_bounds = array<i64: 512, 128>}, {pipeline_mode = #tpu.pipeline_mode<synchronous>, transform_indices = @transform_5, window_bounds = array<i64: 1, 128>}, {transform_indices = @transform_6, window_bounds = array<i64: 1, 1, 512>}, {transform_indices = @transform_7, window_bounds = array<i64: 1, 1, 128>}]} {
    %c0 = arith.constant 0 : index
    %c0_0 = arith.constant 0 : index
    %c0_1 = arith.constant 0 : index
    %0 = vector.load %arg2[%c0, %c0_0, %c0_1] : memref<1x64x64xbf16, #tpu.memory_space<vmem>>, vector<1x64x64xbf16>
    %1 = vector.shape_cast %0 : vector<1x64x64xbf16> to vector<64x64xbf16>
    %c0_2 = arith.constant 0 : index
    %c0_3 = arith.constant 0 : index
    %2 = vector.load %arg3[%c0_2, %c0_3] : memref<64x64xbf16, #tpu.memory_space<vmem>>, vector<64x64xbf16>
    %cst = arith.constant dense<0.000000e+00> : vector<64x64xf32>
    %3 = tpu.matmul %1, %2, %cst {dimension_numbers = #tpu.dot_dimension_numbers<[1], [0], [0], [1], [0, 0, 1, 1], [], []>} : vector<64x64xbf16>, vector<64x64xbf16>, vector<64x64xf32> -> vector<64x64xf32>
    %cst_4 = arith.constant 0.000000e+00 : f32
    %4 = vector.broadcast %cst_4 : f32 to vector<64x64xf32>
    %5 = arith.maximumf %3, %4 : vector<64x64xf32>
    %cst_5 = arith.constant dense<0.000000e+00> : vector<64xf32>
    %6 = vector.multi_reduction <add>, %5, %cst_5 [0] : vector<64x64xf32> to vector<64xf32>
    %7 = vector.shape_cast %6 : vector<64xf32> to vector<1x64xf32>
    %c0_i32 = arith.constant 0 : i32
    %8 = arith.cmpi eq, %arg1, %c0_i32 : i32
    %9 = arith.extui %8 : i1 to i32
    %c0_i32_6 = arith.constant 0 : i32
    %10 = arith.cmpi ne, %9, %c0_i32_6 : i32
    scf.if %10 {
      %cst_13 = arith.constant 0.000000e+00 : f32
      %17 = vector.broadcast %cst_13 : f32 to vector<1x64xf32>
      %c0_14 = arith.constant 0 : index
      %c0_15 = arith.constant 0 : index
      %18 = vector.load %arg10[%c0_14, %c0_15] : memref<1x64xf32, #tpu.memory_space<vmem>>, vector<1x64xf32>
      tpu.vector_store %arg10[%c0_14, %c0_15], %17 {strides = array<i32>} : memref<1x64xf32, #tpu.memory_space<vmem>>, vector<1x64xf32>,
    } else {
    }
    %c0_7 = arith.constant 0 : index
    %c0_8 = arith.constant 0 : index
    %11 = vector.load %arg10[%c0_7, %c0_8] : memref<1x64xf32, #tpu.memory_space<vmem>>, vector<1x64xf32>
    %12 = arith.addf %11, %7 : vector<1x64xf32>
    %c0_9 = arith.constant 0 : index
    %c0_10 = arith.constant 0 : index
    %13 = vector.load %arg10[%c0_9, %c0_10] : memref<1x64xf32, #tpu.memory_space<vmem>>, vector<1x64xf32>
    tpu.vector_store %arg10[%c0_9, %c0_10], %12 {strides = array<i32>} : memref<1x64xf32, #tpu.memory_space<vmem>>, vector<1x64xf32>,
    %c0_i32_11 = arith.constant 0 : i32
    %14 = arith.cmpi eq, %arg1, %c0_i32_11 : i32
    %15 = arith.extui %14 : i1 to i32
    %c0_i32_12 = arith.constant 0 : i32
    %16 = arith.cmpi ne, %15, %c0_i32_12 : i32
    scf.if %16 {
      %c0_13 = arith.constant 0 : index
      %c0_14 = arith.constant 0 : index
      %17 = vector.load %arg10[%c0_13, %c0_14] : memref<1x64xf32, #tpu.memory_space<vmem>>, vector<1x64xf32>
      %cst_15 = arith.constant 1.562500e-02 : f32
      %18 = vector.broadcast %cst_15 : f32 to vector<1x64xf32>
      %19 = arith.mulf %17, %18 : vector<1x64xf32>
      %20 = arith.truncf %19 : vector<1x64xf32> to vector<1x64xbf16>
      %c0_16 = arith.constant 0 : index
      %c0_17 = arith.constant 0 : index
      %21 = vector.load %arg4[%c0_16, %c0_17] : memref<64x512xbf16, #tpu.memory_space<vmem>>, vector<64x512xbf16>
      %cst_18 = arith.constant dense<0.000000e+00> : vector<1x512xf32>
      %22 = tpu.matmul %20, %21, %cst_18 {dimension_numbers = #tpu.dot_dimension_numbers<[1], [0], [0], [1], [0, 0, 1, 1], [], []>} : vector<1x64xbf16>, vector<64x512xbf16>, vector<1x512xf32> -> vector<1x512xf32>
      %c0_19 = arith.constant 0 : index
      %c0_20 = arith.constant 0 : index
      %23 = vector.load %arg5[%c0_19, %c0_20] : memref<1x512xf32, #tpu.memory_space<vmem>>, vector<1x512xf32>
      %24 = arith.addf %22, %23 : vector<1x512xf32>
      %cst_21 = arith.constant 0.000000e+00 : f32
      %25 = vector.broadcast %cst_21 : f32 to vector<1x512xf32>
      %26 = arith.maximumf %24, %25 : vector<1x512xf32>
      %c0_22 = arith.constant 0 : index
      %c0_23 = arith.constant 0 : index
      %c0_24 = arith.constant 0 : index
      %27 = vector.load %arg8[%c0_22, %c0_23, %c0_24] : memref<1x1x512xf32, #tpu.memory_space<vmem>>, vector<1x1x512xf32>
      %28 = vector.shape_cast %27 : vector<1x1x512xf32> to vector<1x512xf32>
      %29 = vector.shape_cast %26 : vector<1x512xf32> to vector<1x1x512xf32>
      tpu.vector_store %arg8[%c0_22, %c0_23, %c0_24], %29 {strides = array<i32>} : memref<1x1x512xf32, #tpu.memory_space<vmem>>, vector<1x1x512xf32>,
      %30 = arith.truncf %26 : vector<1x512xf32> to vector<1x512xbf16>
      %c0_25 = arith.constant 0 : index
      %c0_26 = arith.constant 0 : index
      %31 = vector.load %arg6[%c0_25, %c0_26] : memref<512x128xbf16, #tpu.memory_space<vmem>>, vector<512x128xbf16>
      %cst_27 = arith.constant dense<0.000000e+00> : vector<1x128xf32>
      %32 = tpu.matmul %30, %31, %cst_27 {dimension_numbers = #tpu.dot_dimension_numbers<[1], [0], [0], [1], [0, 0, 1, 1], [], []>} : vector<1x512xbf16>, vector<512x128xbf16>, vector<1x128xf32> -> vector<1x128xf32>
      %c0_28 = arith.constant 0 : index
      %c0_29 = arith.constant 0 : index
      %33 = vector.load %arg7[%c0_28, %c0_29] : memref<1x128xf32, #tpu.memory_space<vmem>>, vector<1x128xf32>
      %34 = arith.addf %32, %33 : vector<1x128xf32>
      %c0_30 = arith.constant 0 : index
      %c0_31 = arith.constant 0 : index
      %c0_32 = arith.constant 0 : index
      %35 = vector.load %arg9[%c0_30, %c0_31, %c0_32] : memref<1x1x128xf32, #tpu.memory_space<vmem>>, vector<1x1x128xf32>
      %36 = vector.shape_cast %35 : vector<1x1x128xf32> to vector<1x128xf32>
      %37 = vector.shape_cast %34 : vector<1x128xf32> to vector<1x1x128xf32>
      tpu.vector_store %arg9[%c0_30, %c0_31, %c0_32], %37 {strides = array<i32>} : memref<1x1x128xf32, #tpu.memory_space<vmem>>, vector<1x1x128xf32>,
    } else {
    }
    return
  }
  func.func @transform_0(%arg0: i32, %arg1: i32) -> (i32, i32, i32) {
    %c0_i32 = arith.constant 0 : i32
    %c0_i32_0 = arith.constant 0 : i32
    return %arg0, %arg1, %c0_i32 : i32, i32, i32
  }
  func.func @transform_1(%arg0: i32, %arg1: i32) -> (i32, i32) {
    %c0_i32 = arith.constant 0 : i32
    %c0_i32_0 = arith.constant 0 : i32
    %c0_i32_1 = arith.constant 0 : i32
    return %c0_i32, %c0_i32_0 : i32, i32
  }
  func.func @transform_2(%arg0: i32, %arg1: i32) -> (i32, i32) {
    %c0_i32 = arith.constant 0 : i32
    %c0_i32_0 = arith.constant 0 : i32
    %c0_i32_1 = arith.constant 0 : i32
    return %c0_i32, %c0_i32_0 : i32, i32
  }
  func.func @transform_3(%arg0: i32, %arg1: i32) -> (i32, i32) {
    %c0_i32 = arith.constant 0 : i32
    %c0_i32_0 = arith.constant 0 : i32
    %c0_i32_1 = arith.constant 0 : i32
    return %c0_i32, %c0_i32_0 : i32, i32
  }
  func.func @transform_4(%arg0: i32, %arg1: i32) -> (i32, i32) {
    %c0_i32 = arith.constant 0 : i32
    %c0_i32_0 = arith.constant 0 : i32
    %c0_i32_1 = arith.constant 0 : i32
    return %c0_i32, %c0_i32_0 : i32, i32
  }
  func.func @transform_5(%arg0: i32, %arg1: i32) -> (i32, i32) {
    %c0_i32 = arith.constant 0 : i32
    %c0_i32_0 = arith.constant 0 : i32
    %c0_i32_1 = arith.constant 0 : i32
    return %c0_i32, %c0_i32_0 : i32, i32
  }
  func.func @transform_6(%arg0: i32, %arg1: i32) -> (i32, i32, i32) {
    %c0_i32 = arith.constant 0 : i32
    %c0_i32_0 = arith.constant 0 : i32
    %c0_i32_1 = arith.constant 0 : i32
    return %arg0, %c0_i32, %c0_i32_0 : i32, i32, i32
  }
  func.func @transform_7(%arg0: i32, %arg1: i32) -> (i32, i32, i32) {
    %c0_i32 = arith.constant 0 : i32
    %c0_i32_0 = arith.constant 0 : i32
    %c0_i32_1 = arith.constant 0 : i32
    return %arg0, %c0_i32, %c0_i32_0 : i32, i32, i32
  }
}

</mosaic_0001>

<bundles_post_ra>
// kernel: posenet_forward.1
= control target key start
LH: loop header
LB: loop body
LE: loop exit
PB: predicated region body
PF: predicated region fallthrough
CT: control target
= control target key end

     0   :  { %13 = vsyncpa [#allocation4], 0  ;;  %s1964_s0 = inlined_call_operand.vmem [shape: bf16[2,64,64], index: 0, kind: input, shape index: {}]   ;;  %s1965_s1 = inlined_call_operand.vmem [shape: bf16[64,64], index: 1, kind: input, shape index: {}]   ;;  %s1966_s2 = inlined_call_operand.vmem [shape: bf16[64,512], index: 2, kind: input, shape index: {}]   ;;  %s1967_s3 = inlined_call_operand.vmem [shape: f32[1,512], index: 3, kind: input, shape index: {}]   ;;  %s1968_s4 = inlined_call_operand.vmem [shape: bf16[512,128], index: 4, kind: input, shape index: {}]   ;;  %s1969_s5 = inlined_call_operand.vmem [shape: f32[1,128], index: 5, kind: input, shape index: {}]   ;;  %s1970_s6 = inlined_call_operand.hbm [shape: f32[2,1,512], index: 6, kind: output, shape index: {0}]   ;;  %s1971_s7 = inlined_call_operand.hbm [shape: f32[2,1,128], index: 7, kind: output, shape index: {1}]  }
   0x1   :  { %15 = vsyncpa [#allocation4 + $0x1], 0 }
   0x2   :  { %16 = vsyncpa [#allocation6], 0 }
   0x3   :  { %18 = vsyncpa [#allocation6 + $0x1], 0  ;;  %s1645_s24 = smov 0   ;;  %s1647_s25 = smov 0  }
   0x4   :  { %s1649_s26 = smov 0   ;;  %s1651_s27 = smov 0  }
   0x5   :  { %s1653_s28 = smov 0   ;;  %s1655_s29 = smov 0  }
   0x6 LB: > { %s1215_s30 = sadd.s32 4294967295, %s1598_s29   ;;  %s1216_s8 = sadd.s32 4294967294, %s1598_s29   ;;  %s1598_s29 = sphi %s1655_s29, %s24_s29   ;;  %s1594_s28 = sphi %s1653_s28, %s1978_s28   ;;  %s1590_s27 = sphi %s1651_s27, %s1977_s27   ;;  %s1586_s26 = sphi %s1649_s26, %s1976_s26   ;;  %s1582_s25 = sphi %s1647_s25, %s1975_s25   ;;  %s1578_s24 = sphi %s1645_s24, %s1974_s24  }
   0x7   : > { %s36_s9 = sadd.s32 1, %s1594_s28  ;;  %s176_s10 = sadd.s32 1, %s1586_s26 }
   0x8   : > { %p38_p0 = scmp.ge.s32.totalorder %s36_s9, 2  ;;  %p186_p1 = scmp.ne.s32.totalorder %s1586_s26, %s1582_s25 }
   0x9   : > { %p187_p2 = scmp.eq.s32.totalorder %s1215_s30, 1  ;;  %p192_p3 = scmp.ne.s32.totalorder %s1582_s25, %s1578_s24 }
   0xa   : > { %s1980_s9 = smov (%p38_p0, %s36_s9), 0  ;;  %p193_p5 = scmp.eq.s32.totalorder %s1216_s8, 1 }
   0xb   : > { %p1685_p4 = por %p187_p2, %p186_p1  ;;  %s173_s12 = ssub.s32 %s1594_s28, %s1980_s9 }
   0xc   : > { %p1219_p6 = scmp.ge.s32.totalorder %s1598_s29, 1  ;;  %p174_p7 = scmp.eq.s32.totalorder %s173_s12, 0 }
   0xd   : > { %p1692_p8 = por %p193_p5, %p192_p3  ;;  %p265_p9 = scmp.lt.s32.totalorder %s1598_s29, 3 }
   0xe   : > { %s1698_s14 = scalar_select %p174_p7, %s1586_s26, %s176_s10  }
   0xf   : > { %p266_p10 = pnand %p1219_p6, %p265_p9 }
  0x10   : > { %v1424_v0 = vld [vmem:[%s1965_s1] sm:$0xff] (!%p266_p10)   ;;  %p306_p11 = scmp.lt.s32.totalorder (!%p266_p10), %s1590_s27, 1  ;;  %v1425_v1 = vld [vmem:[%s1965_s1 + $0x8] sm:$0xff] (!%p266_p10)   ;;  %v1426_v2 = vld [vmem:[%s1965_s1 + $0x10] sm:$0xff] (!%p266_p10)   ;;  %vm376_vm0 = vcmask (!%p266_p10), 523264   ;;  %vm487_vm1 = vcmask (!%p266_p10), 516096  }
  0x11   : > { %269 = sbr.rel (%p266_p10) target bundleno = 744 (0x2e8), region = 44  ;;  %1345 = vmatprep.subr.bf16.mxu0 (!%p266_p10), %v1424_v0  ;;  %v1427_v4 = vld [vmem:[%s1965_s1 + $0x18] sm:$0xff] (!%p266_p10)   ;;  %v1600_v8 = vmov (!%p266_p10), 0.0   ;;  %v1432_v9 = vld [vmem:[%s1966_s2 + $0x4] ss:$16 sps:$4 sm:$0xff] (!%p266_p10)   ;;  %v1601_v23 = vmov (!%p266_p10), 0  }
  0x12   : > { %1346 = vmatpush3.bf16.msra.mxu0 (!%p266_p10), %v1424_v0  ;;  %488 = vst.msk [vmem:[#allocation2] sm:$0x1] (!%p266_p10), %vm487_vm1, %v1600_v8  ;;  %v1436_v10 = vld [vmem:[%s1966_s2 + $0xc] ss:$16 sps:$4 sm:$0xff] (!%p266_p10)   ;;  %v1434_v11 = vld [vmem:[%s1966_s2 + $0x8] ss:$16 sps:$4 sm:$0xff] (!%p266_p10)   ;;  %620 = vmatprep.subr.bf16.mxu1 (!%p266_p10), %v1432_v9 }
  0x13   : > { %1347 = vmatprep.subr.bf16.mxu0 (!%p266_p10), %v1425_v1  ;;  %v1437_v12 = vld [vmem:[%s1966_s2] ss:$16 sps:$4 sm:$0xff] (!%p266_p10)   ;;  %v1438_v13 = vld [vmem:[%s1966_s2 + $0x24] ss:$16 sps:$4 sm:$0xff] (!%p266_p10)   ;;  %v1442_v14 = vld [vmem:[%s1966_s2 + $0x2c] ss:$16 sps:$4 sm:$0xff] (!%p266_p10)   ;;  %652 = vmatprep.mubr.bf16.mxu1 (!%p266_p10), %v1601_v23 }
  0x14   : > { %621 = vmatpush1.bf16.msra.mxu1 (!%p266_p10), %v1437_v12  ;;  %v1440_v15 = vld [vmem:[%s1966_s2 + $0x28] ss:$16 sps:$4 sm:$0xff] (!%p266_p10)   ;;  %v1443_v16 = vld [vmem:[%s1966_s2 + $0x20] ss:$16 sps:$4 sm:$0xff] (!%p266_p10)   ;;  %v1444_v17 = vld [vmem:[%s1966_s2 + $0x44] ss:$16 sps:$4 sm:$0xff] (!%p266_p10)  }
  0x15   : > { %622 = vmatprep.subr.bf16.mxu1 (!%p266_p10), %v1438_v13  ;;  %v1448_v18 = vld [vmem:[%s1966_s2 + $0x4c] ss:$16 sps:$4 sm:$0xff] (!%p266_p10)   ;;  %v1446_v19 = vld [vmem:[%s1966_s2 + $0x48] ss:$16 sps:$4 sm:$0xff] (!%p266_p10)   ;;  %v1449_v20 = vld [vmem:[%s1966_s2 + $0x40] ss:$16 sps:$4 sm:$0xff] (!%p266_p10)  }
  0x16   : > { %1348 = vmatpush3.bf16.msra.mxu0 (!%p266_p10), %v1425_v1  ;;  %v1450_v21 = vld [vmem:[%s1966_s2 + $0x64] ss:$16 sps:$4 sm:$0xff] (!%p266_p10)   ;;  %v1454_v22 = vld [vmem:[%s1966_s2 + $0x6c] ss:$16 sps:$4 sm:$0xff] (!%p266_p10)   ;;  %v1452_v24 = vld [vmem:[%s1966_s2 + $0x68] ss:$16 sps:$4 sm:$0xff] (!%p266_p10)  }
  0x17   : > { %1349 = vmatprep.subr.bf16.mxu0 (!%p266_p10), %v1426_v2  ;;  %v1455_v25 = vld [vmem:[%s1966_s2 + $0x60] ss:$16 sps:$4 sm:$0xff] (!%p266_p10)   ;;  %v1460_v8 = vld [vmem:[%s1968_s4 + $0x48] sm:$0xff] (!%p266_p10)  }
  0x18   : > { %s307_s19 = scalar_select %p306_p11, %s1590_s27, 1  ;;  %623 = vmatpush1.bf16.msra.mxu1 %v1443_v16  ;;  %v1456_v26 = vld [vmem:[%s1968_s4 + $0x40] sm:$0xff]   ;;  %v1461_v9 = vld [vmem:[%s1968_s4 + $0xc8] sm:$0xff]   ;;  %v1464_v12 = vld [vmem:[%s1968_s4 + $0x50] sm:$0xff]  }
  0x19   : > { %624 = vmatprep.subr.bf16.mxu1 %v1444_v17  ;;  %v1457_v27 = vld [vmem:[%s1968_s4 + $0xc0] sm:$0xff]   ;;  %v1465_v13 = vld [vmem:[%s1968_s4 + $0xd0] sm:$0xff]   ;;  %v1468_v16 = vld [vmem:[%s1968_s4 + $0x58] sm:$0xff]  }
  0x1a   : > { %s1291_s22 = sshll.u32 %s307_s19, 5  ;;  %1350 = vmatpush3.bf16.msra.mxu0 %v1426_v2  ;;  %v489_v0 = vld [vmem:[#allocation2] sm:$0x1]  ;;  %v1469_v17 = vld [vmem:[%s1968_s4 + $0xd8] sm:$0xff]   ;;  %s1603_s19 = smov [#allocation3]  }
  0x1b   : > { %s313_s8 = scalar_lea.vmem %s1964_s0, %s1291_s22  ;;  %1351 = vmatprep.subr.bf16.mxu0 %v1427_v4  ;;  %s1881_s22 = sand.u32 1, %s1582_s25  }
  0x1c   : > { %v1428_v3 = vld [vmem:[%s313_s8] sm:$0xff]   ;;  %v1429_v5 = vld [vmem:[%s313_s8 + $0x8] sm:$0xff]   ;;  %v1430_v6 = vld [vmem:[%s313_s8 + $0x10] sm:$0xff]   ;;  %625 = vmatpush1.bf16.msra.mxu1 %v1449_v20  ;;  %s1220_s23 = sshll.u32 %s1881_s22, 2  ;;  %s1083_s17 = scalar_lea.sflag [#allocation4], %s1881_s22 }
  0x1d   : > { %1353 = vmatprep.mubr.msk.bf16.mxu0 %vm376_vm0, %v1428_v3  ;;  %v1431_v7 = vld [vmem:[%s313_s8 + $0x18] sm:$0xff]   ;;  %626 = vmatprep.subr.bf16.mxu1 %v1450_v21  ;;  %v1472_v20 = vld [vmem:[%s1968_s4 + $0x60] sm:$0xff]   ;;  %s298_s30 = scalar_lea.vmem [#allocation3], %s1220_s23  ;;  %s1292_s8 = sshll.u32 %s1590_s27, 6 }
  0x1e   : > { %1352 = vmatpush3.bf16.msra.mxu0 %v1427_v4  ;;  %v1473_v21 = vld [vmem:[%s1968_s4 + $0xe0] sm:$0xff]   ;;  %s1888_s15 = scalar_lea.hbm %s1970_s6, %s1292_s8  ;;  %s1101_s16 = sshll.u32 %s298_s30, 4  ;;  %s1102_s16 = int_to_ptr.vmem [resolvable:$true] %s1101_s16 }
  0x1f   : > { %661 = vmatprep.subr.bf16.mxu0 %v1436_v10  ;;  %v1462_v10 = vld [vmem:[%s1968_s4 + $0x8] sm:$0xff]   ;;  %s1488_s18 = scalar_lea.vmem %s1102_s16, 64  ;;  %s1492_s20 = sshll.u32 %s1603_s19, 4  ;;  %s1493_s20 = int_to_ptr.vmem [resolvable:$false] %s1492_s20 }
  0x20   : > { %627 = vmatpush1.bf16.msra.mxu1 %v1455_v25  ;;  %v1477_v25 = vld [vmem:[%s1968_s4 + $0xe8] sm:$0xff]   ;;  %p1489_p12 = scmp.ne.s32.totalorder %s1102_s16, %s1488_s18  ;;  %s1494_s21 = scalar_lea.vmem %s1493_s20, 128 }
  0x21   : > { %1354 = vmatmul.mubr.msk.bf16.vlgmr.msra.gmra.mrb[0].mxu0 %vm376_vm0, %v1429_v5  ;;  %1301 = vmatprep.subr.bf16.mxu1 %v1456_v26  ;;  %v1458_v5 = vld [vmem:[%s1968_s4] sm:$0xff]   ;;  %v1478_v26 = vld [vmem:[%s1968_s4 + $0x28] sm:$0xff]   ;;  %p1495_p1 = scmp.lt.s32.totalorder %s1102_s16, %s1493_s20  ;;  %p1496_p2 = scmp.lt.s32.totalorder %s1494_s21, %s1488_s18 }
  0x22   : > { %1357 = vmatprep.mubr.msk.bf16.mxu0 %vm376_vm0, %v1430_v6  ;;  %662 = vmatpush1.bf16.msra.mxu0 %v1434_v11  ;;  %v1459_v6 = vld [vmem:[%s1968_s4 + $0x80] sm:$0xff]   ;;  %v1463_v11 = vld [vmem:[%s1968_s4 + $0x88] sm:$0xff]   ;;  %p1490_p13 = pnand %p1489_p12, %p1685_p4 }
  0x23   : > { %663 = vmatprep.subr.bf16.mxu0 %v1442_v14  ;;  %v1466_v14 = vld [vmem:[%s1968_s4 + $0x10] sm:$0xff]   ;;  %p1497_p3 = por %p1496_p2, %p1495_p1 }
  0x24   : > { %p1491_p0 = pneg %p1490_p13 }
  0x26   : > { %664 = vmatpush1.bf16.msra.mxu0 %v1440_v15  ;;  %v1467_v15 = vld [vmem:[%s1968_s4 + $0x90] sm:$0xff]   ;;  %p1498_p5 = pnand %p1497_p3, %p1491_p0 }
  0x27   : > { %665 = vmatprep.subr.bf16.mxu0 %v1448_v18  ;;  %v1470_v18 = vld [vmem:[%s1968_s4 + $0x18] sm:$0xff]  }
  0x29   : > { %1358 = vmatmul.mubr.msk.bf16.gmra.mrb[4].mxu0 %vm376_vm0, %v1431_v7 }
  0x2a   : > { %693 = vmatprep.mubr.bf16.mxu0 %v1601_v23  ;;  %666 = vmatpush1.bf16.msra.mxu0 %v1446_v19  ;;  %v1471_v19 = vld [vmem:[%s1968_s4 + $0x98] sm:$0xff]   ;;  %v1475_v23 = vld [vmem:[%s1968_s4 + $0xa0] sm:$0xff]  }
  0x2b   : > { %667 = vmatprep.subr.bf16.mxu0 %v1454_v22  ;;  %v1474_v22 = vld [vmem:[%s1968_s4 + $0x20] sm:$0xff]  }
  0x2e   : > { %668 = vmatpush1.bf16.msra.mxu0 %v1452_v24  ;;  %v1476_v24 = vld [vmem:[%s1968_s4 + $0x68] sm:$0xff]  }
  0x2f   : > { %1323 = vmatprep.subr.bf16.mxu0 %v1457_v27  ;;  %v1479_v27 = vld [vmem:[%s1968_s4 + $0xa8] sm:$0xff]  }
  0xf4   : > { %v1355_v28 = vpop.f32.mrb[0].mxu0 }
  0xf5   : > { %v423_v29 = vpop.f32.mrb[1].mxu0  ;;  %v456_v33 = vmax.f32 %v1355_v28, 0.0  ;;  %v1480_v28 = vld [vmem:[%s1968_s4 + $0x70] sm:$0xff]  }
  0xf6   : > { %v454_v30 = vmax.f32 %v423_v29, 0.0  ;;  %v1356_v31 = vpop.f32.mrb[2].mxu0  ;;  %v1481_v29 = vld [vmem:[%s1968_s4 + $0xf0] sm:$0xff]  }
  0xf7   : > { %v426_v32 = vpop.f32.mrb[3].mxu0  ;;  %v457_v36 = vmax.f32 %v1356_v31, 0.0  ;;  %v465_v39 = vsel %vm376_vm0, %v456_v33, 0.0  ;;  %v1483_v31 = vld [vmem:[%s1968_s4 + $0xb0] sm:$0xff]   ;;  %v1485_v33 = vld [vmem:[%s1968_s4 + $0xf8] sm:$0xff]  }
  0xf8   : > { %v455_v34 = vmax.f32 %v426_v32, 0.0  ;;  %v462_v35 = vsel %vm376_vm0, %v454_v30, 0.0  ;;  %v1482_v30 = vld [vmem:[%s1968_s4 + $0x30] sm:$0xff]   ;;  %v1484_v32 = vld [vmem:[%s1968_s4 + $0x78] sm:$0xff]  }
  0xf9   : > { %v467_v43 = vsel %vm376_vm0, %v457_v36, 0.0  ;;  %v597_v36 = vlaneseq }
  0xfa   : > { %v463_v37 = vsel %vm376_vm0, %v455_v34, 0.0  ;;  %v1486_v34 = vld [vmem:[%s1968_s4 + $0x38] sm:$0xff]  }
  0xfb   : > { %v464_v38 = vadd.f32 %v463_v37, %v462_v35  ;;  %v1487_v35 = vld [vmem:[%s1968_s4 + $0xb8] sm:$0xff]   ;;  %v598_v37 = vshrl.u32 %v597_v36, 7  ;;  %vm737_vm2 = vcmp.lt.s32.totalorder %v597_v36, 512 }
  0xfc   : > { %v1359_v40 = vpop.f32.mrb[4].mxu0 }
  0xfd   : > { %v466_v41 = vadd.f32 %v465_v39, %v464_v38  ;;  %v439_v42 = vpop.f32.mrb[5].mxu0  ;;  %v460_v48 = vmax.f32 %v1359_v40, 0.0  ;;  %v599_v38 = vsub.s32 0, %v598_v37  ;;  %v607_v39 = vsub.s32 2, %v598_v37  ;;  %v515_v40 = vld [vmem:[%s1967_s3] sm:$0xf] }
  0xfe   : > { %v458_v44 = vmax.f32 %v439_v42, 0.0  ;;  %v1360_v45 = vpop.f32.mrb[6].mxu0  ;;  %v611_v42 = vsub.s32 3, %v598_v37 }
  0xff   : > { %v468_v46 = vadd.f32 %v467_v43, %v466_v41  ;;  %v442_v47 = vpop.f32.mrb[7].mxu0  ;;  %v461_v52 = vmax.f32 %v1360_v45, 0.0  ;;  %v473_v55 = vsel %vm376_vm0, %v460_v48, 0.0  ;;  %v603_v41 = vsub.s32 1, %v598_v37 }
 0x100   : > { %v469_v49 = vsel %vm376_vm0, %v458_v44, 0.0  ;;  %v459_v50 = vmax.f32 %v442_v47, 0.0  ;;  %v1602_v43 = vmov 1966171168   ;;  %v600_v45 = vrot.slane %v515_v40, %v599_v38 }
 0x101   : > { %v470_v51 = vadd.f32 %v469_v49, %v468_v46  ;;  %v475_v57 = vsel %vm376_vm0, %v461_v52, 0.0  ;;  %v713_v44 = vunpack.c.l.s4 %v1602_v43  ;;  %v608_v46 = vrot.slane %v515_v40, %v607_v39 }
 0x102   : > { %v471_v53 = vsel %vm376_vm0, %v459_v50, 0.0  ;;  %v604_v47 = vrot.slane %v515_v40, %v603_v41  ;;  %v612_v48 = vrot.slane %v515_v40, %v611_v42 }
 0x103   : > { %v472_v54 = vadd.f32 %v471_v53, %v470_v51  ;;  %v714_v51 = vunpack.c.0.s8 %v713_v44 }
 0x105   : > { %v474_v56 = vadd.f32 %v473_v55, %v472_v54 }
 0x107   : > { %v476_v58 = vadd.f32 %v475_v57, %v474_v56 }
 0x109   : > { %v477_v59 = vrot.slane %v476_v58, 4 }
 0x10b   : > { %v478_v60 = vadd.f32 %v477_v59, %v476_v58 }
 0x10d   : > { %v479_v61 = vrot.slane %v478_v60, 2 }
 0x10f   : > { %v480_v62 = vadd.f32 %v479_v61, %v478_v60 }
 0x111   : > { %v481_v63 = vrot.slane %v480_v62, 1 }
 0x113   : > { %v482_v1 = vadd.f32 %v481_v63, %v480_v62 }
 0x115   : > { %v490_v2 = vadd.f32 %v489_v0, %v482_v1  ;;  %v717_v1 = vsub.s32 %v714_v51, %v598_v37 }
 0x117   : > { %492 = vst.msk [vmem:[#allocation2] sm:$0x1] %vm487_vm1, %v490_v2 }
 0x11e   : > { %v496_v3 = vld [vmem:[#allocation2] sm:$0x1] }
 0x11f   : > { %v497_v4 = vmul.f32 0.015625, %v496_v3 }
 0x121   : > { %v498_v7 = vpack.c.bf16 %v497_v4, %v497_v4 }
 0x123   : > { %1251 = vmatmul.mubr.msk.bf16.vlgmr.msra.gmra.mrb[0].mxu1 %vm376_vm0, %v498_v7  ;;  %1252 = vmatmul.mubr.msk.bf16.vlgmr.msra.gmra.mrb[8].mxu0 %vm376_vm0, %v498_v7 }
 0x124   : > { %1302 = vmatpush3.bf16.msra.mxu1 %v1458_v5  ;;  %1324 = vmatpush3.bf16.msra.mxu0 %v1459_v6 }
 0x125   : > { %1303 = vmatprep.subr.bf16.mxu1 %v1460_v8  ;;  %1325 = vmatprep.subr.bf16.mxu0 %v1461_v9 }
 0x128   : > { %1304 = vmatpush3.bf16.msra.mxu1 %v1462_v10  ;;  %1326 = vmatpush3.bf16.msra.mxu0 %v1463_v11 }
 0x129   : > { %1305 = vmatprep.subr.bf16.mxu1 %v1464_v12  ;;  %1327 = vmatprep.subr.bf16.mxu0 %v1465_v13 }
 0x12c   : > { %1306 = vmatpush3.bf16.msra.mxu1 %v1466_v14  ;;  %1328 = vmatpush3.bf16.msra.mxu0 %v1467_v15 }
 0x12d   : > { %1307 = vmatprep.subr.bf16.mxu1 %v1468_v16  ;;  %1329 = vmatprep.subr.bf16.mxu0 %v1469_v17 }
 0x130   : > { %1308 = vmatpush3.bf16.msra.mxu1 %v1470_v18  ;;  %1330 = vmatpush3.bf16.msra.mxu0 %v1471_v19 }
 0x131   : > { %1309 = vmatprep.subr.bf16.mxu1 %v1472_v20  ;;  %1331 = vmatprep.subr.bf16.mxu0 %v1473_v21 }
 0x134   : > { %1310 = vmatpush3.bf16.msra.mxu1 %v1474_v22  ;;  %1332 = vmatpush3.bf16.msra.mxu0 %v1475_v23 }
 0x135   : > { %1311 = vmatprep.subr.bf16.mxu1 %v1476_v24  ;;  %1333 = vmatprep.subr.bf16.mxu0 %v1477_v25 }
 0x138   : > { %1312 = vmatpush3.bf16.msra.mxu1 %v1478_v26  ;;  %1334 = vmatpush3.bf16.msra.mxu0 %v1479_v27 }
 0x139   : > { %1313 = vmatprep.subr.bf16.mxu1 %v1480_v28  ;;  %1335 = vmatprep.subr.bf16.mxu0 %v1481_v29 }
 0x13c   : > { %1314 = vmatpush3.bf16.msra.mxu1 %v1482_v30  ;;  %1336 = vmatpush3.bf16.msra.mxu0 %v1483_v31 }
 0x13d   : > { %1315 = vmatprep.subr.bf16.mxu1 %v1484_v32  ;;  %1337 = vmatprep.subr.bf16.mxu0 %v1485_v33 }
 0x140   : > { %1316 = vmatpush3.bf16.msra.mxu1 %v1486_v34  ;;  %1338 = vmatpush3.bf16.msra.mxu0 %v1487_v35 }
 0x1f6   : > { %v654_v49 = vpop.f32.mrb[0].mxu1  ;;  %v695_v50 = vpop.f32.mrb[8].mxu0 }
 0x1f7   : > { %v655_v52 = vadd.f32 %v654_v49, %v600_v45  ;;  %v696_v53 = vadd.f32 %v695_v50, %v608_v46  ;;  %v656_v54 = vpop.f32.mrb[1].mxu1  ;;  %v697_v55 = vpop.f32.mrb[9].mxu0 }
 0x1f8   : > { %v657_v56 = vadd.f32 %v656_v54, %v604_v47  ;;  %v698_v57 = vadd.f32 %v697_v55, %v612_v48  ;;  %v658_v58 = vpop.f32.mrb[2].mxu1  ;;  %v699_v59 = vpop.f32.mrb[10].mxu0 }
 0x1f9   : > { %v702_v60 = vmax.f32 %v655_v52, 0.0  ;;  %v704_v61 = vmax.f32 %v696_v53, 0.0  ;;  %v659_v62 = vpop.f32.mrb[3].mxu1  ;;  %v700_v63 = vpop.f32.mrb[11].mxu0 }
 0x1fa   : > { %v703_v0 = vmax.f32 %v657_v56, 0.0  ;;  %v705_v2 = vmax.f32 %v698_v57, 0.0 }
 0x1fb   : > { %v740_v7 = vpack.c.bf16 %v702_v60, %v702_v60  ;;  %v742_v8 = vpack.c.bf16 %v704_v61, %v704_v61 }
 0x1fc   : > { %v710_v3 = vcombine.low %v702_v60, %v703_v0  ;;  %v741_v4 = vpack.c.bf16 %v703_v0, %v703_v0  ;;  %v711_v5 = vcombine.low %v704_v61, %v705_v2  ;;  %v743_v6 = vpack.c.bf16 %v705_v2, %v705_v2 }
 0x1fe   : > { %v718_v9 = vrot.slane %v710_v3, %v717_v1  ;;  %v725_v10 = vrot.slane %v711_v5, %v717_v1  ;;  %1033 = vmatprep.mubr.bf16.mxu1 %v741_v4  ;;  %1073 = vmatprep.mubr.bf16.mxu0 %v743_v6 }
 0x1ff   : > { %1034 = vmatmul.mubr.bf16.vlgmr.msra.gmra.mrb[4].mxu1 %v740_v7  ;;  %1074 = vmatmul.mubr.bf16.vlgmr.msra.gmra.mrb[12].mxu0 %v742_v8 }
 0x200   : > { %v726_v11 = vcombine.low %v718_v9, %v725_v10 }
 0x202   : > { %v733_v12 = vrot.slane %v726_v11, %v717_v1 }
 0x204   : > { %739 = vst.msk [vmem:[%s298_s30] sm:$0xf] %vm737_vm2, %v733_v12 }
 0x205   : > { %1501 = shalt.err (!%p1498_p5)
}
 0x206   : > { %s1502_s23 = scalar_lea.hbm %s1888_s15, 64  ;;  %s1506_s10 = scalar_lea.hbm %s1970_s6, 128 }
 0x207   : > { %p1503_p6 = scmp.ne.s32.totalorder %s1888_s15, %s1502_s23  ;;  %p1507_p10 = scmp.lt.u32.totalorder %s1888_s15, %s1970_s6 }
 0x208   : > { %p1508_p11 = scmp.lt.u32.totalorder %s1506_s10, %s1502_s23  ;;  %p1510_p13 = scmp.lt.u32.totalorder %s1502_s23, %s1888_s15 }
 0x209   : > { %p1504_p7 = pnand %p1503_p6, %p1685_p4 }
 0x20a   : > { %p1509_p12 = por %p1508_p11, %p1507_p10 }
 0x20b   : > { %p1505_p9 = pneg %p1504_p7 }
 0x20c   : > { %p1511_p0 = por %p1510_p13, %p1509_p12 }
 0x20e   : > { %p1512_p1 = pnand %p1511_p0, %p1505_p9 }
 0x210   : > { %1515 = shalt.err (!%p1512_p1)
}
 0x211   : > { %1361 = dma.vmem_to_hbm [thread:$0]  (%p1685_p4), %s1102_s16, 64, %s1888_s15, %s1083_s17   ;;  %v808_v15 = vld [vmem:[%s1969_s5] sm:$0x1] }
 0x212   : > { %s1288_s21 = sshll.u32 %s1590_s27, 4  ;;  %s304_s23 = scalar_lea.vmem [#allocation5], %s1881_s22 }
 0x213   : > { %s1114_s30 = sshll.u32 %s304_s23, 4  ;;  %s1916_s17 = scalar_lea.hbm %s1971_s7, %s1288_s21  ;;  %s1918_s30 = int_to_ptr.vmem [resolvable:$true] %s1114_s30 }
 0x214   : > { %s1088_s8 = scalar_lea.sflag [#allocation6], %s1881_s22  ;;  %s1516_s10 = scalar_lea.vmem %s1918_s30, 16 }
 0x215   : > { %p1517_p2 = scmp.ne.s32.totalorder %s1918_s30, %s1516_s10  ;;  %s1604_s27 = smov [#allocation5]  }
 0x216   : > { %s1520_s12 = sshll.u32 %s1604_s27, 4  ;;  %s1521_s12 = int_to_ptr.vmem [resolvable:$false] %s1520_s12 }
 0x217   : > { %p1518_p3 = pnand %p1517_p2, %p1685_p4  ;;  %s1522_s19 = scalar_lea.vmem %s1521_s12, 32 }
 0x218   : > { %p1523_p6 = scmp.lt.s32.totalorder %s1918_s30, %s1521_s12  ;;  %p1524_p7 = scmp.lt.s32.totalorder %s1522_s19, %s1516_s10 }
 0x219   : > { %p1519_p5 = pneg %p1518_p3 }
 0x21a   : > { %p1525_p9 = por %p1524_p7, %p1523_p6 }
 0x21c   : > { %p1526_p10 = pnand %p1525_p9, %p1519_p5 }
 0x2d2   : > { %v1317_v13 = vpop.f32.mrb[4].mxu1  ;;  %v1339_v14 = vpop.f32.mrb[12].mxu0 }
 0x2d3   : > { %v1318_v16 = vpop.f32.mrb[5].mxu1  ;;  %v1340_v17 = vpop.f32.mrb[13].mxu0 }
 0x2d4   : > { %v1319_v18 = vadd.f32 %v1318_v16, %v1317_v13  ;;  %v1341_v19 = vadd.f32 %v1340_v17, %v1339_v14  ;;  %v1320_v20 = vpop.f32.mrb[6].mxu1  ;;  %v1342_v21 = vpop.f32.mrb[14].mxu0 }
 0x2d5   : > { %v1321_v22 = vpop.f32.mrb[7].mxu1  ;;  %v1343_v23 = vpop.f32.mrb[15].mxu0 }
 0x2d6   : > { %v1036_v24 = vadd.f32 %v1319_v18, %v808_v15 }
 0x2d8   : > { %v1076_v25 = vadd.f32 %v1341_v19, %v1036_v24 }
 0x2da   : > { %1081 = vst [vmem:[%s304_s23] sm:$0x1] %v1076_v25 }
 0x2db   : > { %1529 = shalt.err (!%p1526_p10)
}
 0x2dc   : > { %s1530_s22 = scalar_lea.hbm %s1916_s17, 16  ;;  %s1534_s21 = scalar_lea.hbm %s1971_s7, 32 }
 0x2dd   : > { %p1531_p11 = scmp.ne.s32.totalorder %s1916_s17, %s1530_s22  ;;  %p1535_p0 = scmp.lt.u32.totalorder %s1916_s17, %s1971_s7 }
 0x2de   : > { %p1536_p1 = scmp.lt.u32.totalorder %s1534_s21, %s1530_s22  ;;  %p1538_p3 = scmp.lt.u32.totalorder %s1530_s22, %s1916_s17 }
 0x2df   : > { %p1532_p12 = pnand %p1531_p11, %p1685_p4 }
 0x2e0   : > { %p1537_p2 = por %p1536_p1, %p1535_p0 }
 0x2e1   : > { %p1533_p13 = pneg %p1532_p12 }
 0x2e2   : > { %p1539_p5 = por %p1538_p3, %p1537_p2 }
 0x2e4   : > { %p1540_p6 = pnand %p1539_p5, %p1533_p13 }
 0x2e6   : > { %1543 = shalt.err (!%p1540_p6)
}
 0x2e7   : > { %1362 = dma.vmem_to_hbm [thread:$0]  (%p1685_p4), %s1918_s30, 16, %s1916_s17, %s1088_s8  }
 0x2e8 PF: > { %p1372_p7 = scmp.ge.s32.totalorder %s1598_s29, 2  ;;  %s1126_s16 = sand.u32 1, %s1578_s24  }
 0x2e9   : > { %s1127_s10 = scalar_lea.sflag [#allocation4], %s1126_s16 }
 0x2ea   : > { %p1366_p9 = pnand %p1372_p7, %p1692_p8 }
 0x2ec   : > { %1569 = dma.done.wait (!%p1366_p9), %s1127_s10, 64  }
 0x2ed   : > { %1571 = vsyncadd (!%p1366_p9), %s1127_s10, 4294967232  ;;  %s1136_s27 = scalar_lea.sflag [#allocation6], %s1126_s16 }
 0x2ee   : > { %1573 = dma.done.wait (!%p1366_p9), %s1136_s27, 16  }
 0x2ef   : > { %1575 = vsyncadd (!%p1366_p9), %s1136_s27, 4294967280  ;;  %s24_s29 = sadd.s32 1, %s1598_s29   ;;  %s1974_s24 = smov %s1582_s25 }
 0x2f0   : > { %p21_p10 = scmp.ge.s32.totalorder %s24_s29, 4   ;;  %s1975_s25 = smov %s1586_s26 }
 0x2f1   : > { %s1976_s26 = smov %s1698_s14  ;;  %s1977_s27 = smov %s1594_s28 }
 0x2f2   : > { %s1978_s28 = smov %s1980_s9  ;;  %23 = sbr.rel (!%p21_p10) target bundleno = 6 (0x6), region = 104 }
 0x2f9   :  { %1140 = vsyncpa [#allocation4], 1 }
 0x2fa   :  { %1142 = vsyncpa [#allocation4 + $0x1], 1 }
 0x2fb   :  { %1143 = vsyncpa [#allocation6], 1 }
 0x2fc   :  { %1145 = vsyncpa [#allocation6 + $0x1], 1 }

</bundles_post_ra>
